<compile_context>
chip_gen: v7x
topology: tpu7x:2x2x1
jax: 0.10.0
libtpu: 0.0.40
codegen_flags: <defaults>
</compile_context>

<pallas_src>
import functools

import jax
import jax.numpy as jnp
from jax.experimental import pallas as pl
from jax.experimental.pallas import tpu as pltpu

LEAK = 0.2
EPS = 1e-5  # PyTorch BatchNorm2d default


def _leaky(x):
    return jnp.where(x > 0, x, LEAK * x)


# --------------------------------------------------------------------------- #
# Kernels
# --------------------------------------------------------------------------- #
def _conv_bn_stats_kernel(x_ref, wb_ref, *rest, H, apply_act):
    """One (TN*H, W*C) row tile per grid step.

    Optionally applies the previous BN affine + LeakyReLU (f32 VPU), then the
    3x3 'same' conv as 3 MXU matmuls against block-banded W-weights; the H taps
    are free sublane rolls masked at per-image boundaries (zero 'same' padding).
    Writes the pre-BN activation tile plus a merged (sum, sumsq) stats row pair.
    """
    if apply_act:
        scale_ref, shift_ref, y_ref, st_ref = rest
    else:
        y_ref, st_ref = rest

    x = x_ref[...].astype(jnp.float32)                      # (TM, W*Cin)
    if apply_act:                                           # BN affine + LeakyReLU (f32)
        x = _leaky(x * scale_ref[...] + shift_ref[...])

    tm = x.shape[0]
    # Per-image row position; masks the rows where the shifted tap would cross
    # an image boundary (implements the zero 'same' padding along H).
    hpos = jax.lax.broadcasted_iota(jnp.int32, (tm, 1), 0) % H
    not_top = (hpos != 0).astype(jnp.float32)               # valid for tap h-1
    not_bot = (hpos != H - 1).astype(jnp.float32)           # valid for tap h+1

    x_up = pltpu.roll(x, shift=1, axis=0) * not_top          # xs[r] = x[r-1]
    x_dn = pltpu.roll(x, shift=tm - 1, axis=0) * not_bot     # xs[r] = x[r+1]

    mm = wb_ref.dtype                                        # f32 or bf16 (MXU only)
    acc = jnp.dot(x_up.astype(mm), wb_ref[0], preferred_element_type=jnp.float32)
    acc = acc + jnp.dot(x.astype(mm), wb_ref[1], preferred_element_type=jnp.float32)
    acc = acc + jnp.dot(x_dn.astype(mm), wb_ref[2], preferred_element_type=jnp.float32)

    y_ref[...] = acc.astype(y_ref.dtype)                     # lane-dense slab store
    s = jnp.sum(acc, axis=0, keepdims=True)
    sq = jnp.sum(acc * acc, axis=0, keepdims=True)
    st_ref[0] = jnp.concatenate([s, sq], axis=0)             # single merged store


def _bn_residual_act_kernel(y_ref, x_ref, scale_ref, shift_ref, o_ref):
    """out = LeakyReLU(BN2(conv2_out) + residual), elementwise over row tiles."""
    y = y_ref[...].astype(jnp.float32)
    o_ref[...] = _leaky(y * scale_ref[...] + shift_ref[...] + x_ref[...])


# --------------------------------------------------------------------------- #
# Wrapper helpers
# --------------------------------------------------------------------------- #
def _banded_weights(wk, W):
    """wk: (3, 3, Cin, Cout) -> (3, W*Cin, W*Cout) block-banded matrices.

    Wband[dy][(w+dx-1)*Cin+ci, w*Cout+co] = wk[dy, dx, ci, co]; out-of-range W
    positions are dropped (zero 'same' padding along W folded into the weights).
    """
    _, _, ci, co = wk.shape
    bands = []
    for dy in range(3):
        acc = jnp.zeros((W, ci, W, co), jnp.float32)
        for dx in range(3):
            e = jnp.eye(W, W, k=1 - dx, dtype=jnp.float32)
            acc = acc + jnp.einsum('ab,io->aibo', e, wk[dy, dx])
        bands.append(acc.reshape(W * ci, W * co))
    return jnp.stack(bands, axis=0)


def _choose_tn(N, H, target_rows=256):
    """Images per grid step: largest divisor of N with TN*H <= target (valid blocks)."""
    best = None
    for tn in range(1, N + 1):
        if N % tn:
            continue
        tm = tn * H
        if tm % 8 != 0 and tn != N:
            continue
        if tm <= target_rows or best is None:
            best = tn
    return best


def _row_tile(rows, target=512):
    """Largest row tile <= target that divides `rows` and keeps valid blocks."""
    if rows <= target:
        return rows
    for t in range(target, 0, -1):
        if rows % t == 0 and t % 8 == 0:
            return t
    return rows


def _conv_pass(x2, Wb, H, scale_row=None, shift_row=None,
               mm_dtype=jnp.float32, out_dtype=jnp.float32):
    """One conv (+optional preceding BN affine+LeakyReLU) pass over (N*H, W*C)."""
    rows, wci = x2.shape
    wco = Wb.shape[-1]
    N = rows // H
    tn = _choose_tn(N, H)
    tm = tn * H
    n_tiles = rows // tm
    apply_act = scale_row is not None

    in_specs = [
        pl.BlockSpec((tm, wci), lambda i: (i, 0)),           # activation row tile
        pl.BlockSpec((3, wci, wco), lambda i: (0, 0, 0)),    # banded conv weights
    ]
    args = [x2, Wb.astype(mm_dtype)]
    if apply_act:
        in_specs += [pl.BlockSpec((1, wci), lambda i: (0, 0)),
                     pl.BlockSpec((1, wci), lambda i: (0, 0))]
        args += [scale_row, shift_row]

    out_shape = (jax.ShapeDtypeStruct((rows, wco), out_dtype),
                 jax.ShapeDtypeStruct((n_tiles, 2, wco), jnp.float32))
    out_specs = (pl.BlockSpec((tm, wco), lambda i: (i, 0)),
                 pl.BlockSpec((1, 2, wco), lambda i: (i, 0, 0)))

    kern = functools.partial(_conv_bn_stats_kernel, H=H, apply_act=apply_act)
    return pl.pallas_call(
        kern,
        grid=(n_tiles,),
        in_specs=in_specs,
        out_specs=out_specs,
        out_shape=out_shape,
        compiler_params=pltpu.CompilerParams(dimension_semantics=("parallel",)),
    )(*args)


def _bn_affine(stats, gamma, beta, W, C, count):
    """Reduce per-tile (sum, sumsq) -> per-channel BN scale/shift rows (exact BN)."""
    s = stats.sum(axis=0).reshape(2, W, C).sum(axis=1)       # (2, C), tiny
    mean = s[0] / count
    var = jnp.maximum(s[1] / count - mean * mean, 0.0)       # biased (training) variance
    inv = jax.lax.rsqrt(var + EPS)
    scale = gamma.astype(jnp.float32) * inv
    shift = beta.astype(jnp.float32) - mean * scale
    return (jnp.tile(scale, W).reshape(1, W * C),
            jnp.tile(shift, W).reshape(1, W * C))


def _bn_residual_act(y2, x2, scale_wc, shift_wc):
    """BN2 affine + residual add + LeakyReLU; lane-dense (>=128 lanes), big row tiles."""
    rows, wc = x2.shape
    m = 1
    if wc < 128:                                             # fold rows into lanes
        for cand in range(1, rows + 1):
            if rows % cand == 0 and cand * wc >= 128:
                m = cand
                break
        else:
            m = rows
    L = m * wc
    r2 = rows // m
    yv = y2.reshape(r2, L)
    xv = x2.reshape(r2, L)
    sc = jnp.tile(scale_wc.reshape(-1), m).reshape(1, L)
    sh = jnp.tile(shift_wc.reshape(-1), m).reshape(1, L)

    tr = _row_tile(r2, 512)
    blk = pl.BlockSpec((tr, L), lambda i: (i, 0))
    vec = pl.BlockSpec((1, L), lambda i: (0, 0))
    out = pl.pallas_call(
        _bn_residual_act_kernel,
        grid=(r2 // tr,),
        in_specs=[blk, blk, vec, vec],
        out_specs=blk,
        out_shape=jax.ShapeDtypeStruct((r2, L), jnp.float32),
        compiler_params=pltpu.CompilerParams(dimension_semantics=("parallel",)),
    )(yv, xv, sc, sh)
    return out.reshape(rows, wc)


def residual_block_d(x_nchw, params, *, matmul_dtype=jnp.float32):
    """x_nchw: (N, C, H, W) float32 (PyTorch layout). Returns (N, C, H, W).

    matmul_dtype=bfloat16 uses bf16 MXU operands and bf16 intermediate storage
    (valid on v5e/v6e/v7x — all VPU math stays f32); f32 is the strict path.
    """
    N, C, H, W = x_nchw.shape
    Cout = params["w1"].shape[0]
    assert Cout == C, "residual add requires in_channels == out_channels"
    store_dtype = jnp.bfloat16 if matmul_dtype == jnp.bfloat16 else jnp.float32

    # Lane-dense NHWC layout flattened to (N*H, W*C); no jnp.pad anywhere.
    x2 = jnp.transpose(x_nchw, (0, 2, 3, 1)).reshape(N * H, W * C).astype(jnp.float32)

    # PyTorch conv weight (Cout, Cin, kH, kW) -> (kH, kW, Cin, Cout) -> banded.
    wk1 = jnp.transpose(params["w1"], (2, 3, 1, 0)).astype(jnp.float32)
    wk2 = jnp.transpose(params["w2"], (2, 3, 1, 0)).astype(jnp.float32)
    Wb1 = _banded_weights(wk1, W)
    Wb2 = _banded_weights(wk2, W)
    count = float(N * H * W)
    # Conv biases b1/b2 are intentionally NOT applied: BatchNorm immediately
    # follows each conv, so the bias is absorbed exactly into the batch mean.

    # Pass 1: conv1 and BN1 batch stats.
    y1, st1 = _conv_pass(x2, Wb1, H, mm_dtype=matmul_dtype, out_dtype=store_dtype)
    sc1, sh1 = _bn_affine(st1, params["g1"], params["be1"], W, Cout, count)

    # Pass 2: BN1 affine + LeakyReLU + conv2 and BN2 batch stats.
    y2, st2 = _conv_pass(y1, Wb2, H, scale_row=sc1, shift_row=sh1,
                         mm_dtype=matmul_dtype, out_dtype=store_dtype)
    sc2, sh2 = _bn_affine(st2, params["g2"], params["be2"], W, Cout, count)

    # Pass 3: BN2 affine + residual add + LeakyReLU (lane-dense elementwise).
    out2 = _bn_residual_act(y2, x2, sc2, sh2)

    return jnp.transpose(out2.reshape(N, H, W, Cout), (0, 3, 1, 2))


# ------------------------------ pure-JAX reference --------------------------- #
def _conv_ref(x_nchw, w, b):
    y = jax.lax.conv_general_dilated(
        x_nchw, w, window_strides=(1, 1), padding=((1, 1), (1, 1)),
        dimension_numbers=("NCHW", "OIHW", "NCHW"))
    return y + b[None, :, None, None]


def _bn_ref(x_nchw, g, be):
    mean = jnp.mean(x_nchw, axis=(0, 2, 3), keepdims=True)
    var = jnp.mean((x_nchw - mean) ** 2, axis=(0, 2, 3), keepdims=True)
    return g[None, :, None, None] * (x_nchw - mean) * jax.lax.rsqrt(var + EPS) \
        + be[None, :, None, None]


def residual_block_d_ref(x, p):
    out = _leaky(_bn_ref(_conv_ref(x, p["w1"], p["b1"]), p["g1"], p["be1"]))
    out = _bn_ref(_conv_ref(out, p["w2"], p["b2"]), p["g2"], p["be2"])
    return _leaky(out + x)


if __name__ == "__main__":
    N, C, H, W = 2, 4, 16, 16   # in_channels == out_channels == 4
    key = jax.random.PRNGKey(0)
    kx, kw1, kb1, kw2, kb2 = jax.random.split(key, 5)

    x = jax.random.normal(kx, (N, C, H, W), dtype=jnp.float32)

    params = {
        "w1": 0.1 * jax.random.normal(kw1, (C, C, 3, 3), dtype=jnp.float32),
        "b1": 0.1 * jax.random.normal(kb1, (C,), dtype=jnp.float32),
        "g1": jnp.ones((C,), jnp.float32),    # BatchNorm gamma init
        "be1": jnp.zeros((C,), jnp.float32),  # BatchNorm beta init
        "w2": 0.1 * jax.random.normal(kw2, (C, C, 3, 3), dtype=jnp.float32),
        "b2": 0.1 * jax.random.normal(kb2, (C,), dtype=jnp.float32),
        "g2": jnp.ones((C,), jnp.float32),
        "be2": jnp.zeros((C,), jnp.float32),
    }

    # f32 MXU operands: strict check vs f32 reference.
    run_f32 = jax.jit(residual_block_d)
    out = jax.block_until_ready(run_f32(x, params))
    ref = jax.block_until_ready(residual_block_d_ref(x, params))
    assert out.shape == (N, C, H, W)
    max_err = jnp.max(jnp.abs(out - ref))
    assert jnp.allclose(out, ref, rtol=1e-3, atol=1e-3), f"f32 max abs err {max_err}"

    # bf16 MXU operands + bf16 intermediates (all generations); loose sanity check.
    run_bf16 = jax.jit(functools.partial(residual_block_d, matmul_dtype=jnp.bfloat16))
    out_bf16 = jax.block_until_ready(run_bf16(x, params))
    assert bool(jnp.all(jnp.isfinite(out_bf16)))
    assert float(jnp.max(jnp.abs(out_bf16 - ref))) < 0.25, "bf16 path sanity check failed"

    print("KERNEL_OK")
</pallas_src>

<mosaic_0001>
module attributes {stable_mosaic.version = 11 : i64} {
  func.func @_conv_bn_stats_kernel(%arg0: i32, %arg1: memref<32x64xf32, #tpu.memory_space<vmem>>, %arg2: memref<3x64x64xf32, #tpu.memory_space<vmem>>, %arg3: memref<32x64xf32, #tpu.memory_space<vmem>>, %arg4: memref<1x2x64xf32, #tpu.memory_space<vmem>>) attributes {dimension_semantics = [#tpu.dimension_semantics<parallel>], iteration_bounds = array<i64: 1>, scalar_prefetch = 0 : i64, scratch_operands = 0 : i64, tpu.core_type = #tpu.core_type<tc>, window_params = [{transform_indices = @transform_0, window_bounds = array<i64: 32, 64>}, {pipeline_mode = #tpu.pipeline_mode<synchronous>, transform_indices = @transform_1, window_bounds = array<i64: 3, 64, 64>}, {transform_indices = @transform_2, window_bounds = array<i64: 32, 64>}, {transform_indices = @transform_3, window_bounds = array<i64: 1, 2, 64>}]} {
    %c0 = arith.constant 0 : index
    %c0_0 = arith.constant 0 : index
    %0 = vector.load %arg1[%c0, %c0_0] : memref<32x64xf32, #tpu.memory_space<vmem>>, vector<32x64xf32>
    %1 = tpu.iota {dimensions = array<i32: 0>} : vector<32x1xi32>
    %c16_i32 = arith.constant 16 : i32
    %c0_i32 = arith.constant 0 : i32
    %2 = arith.cmpi eq, %c16_i32, %c0_i32 : i32
    %c1_i32 = arith.constant 1 : i32
    %3 = arith.select %2, %c1_i32, %c16_i32 : i32
    %4 = vector.broadcast %3 : i32 to vector<32x1xi32>
    %5 = arith.remsi %1, %4 : vector<32x1xi32>
    %c0_i32_1 = arith.constant 0 : i32
    %6 = vector.broadcast %c0_i32_1 : i32 to vector<32x1xi32>
    %7 = arith.cmpi ne, %5, %6 : vector<32x1xi32>
    %c0_i32_2 = arith.constant 0 : i32
    %8 = vector.broadcast %c0_i32_2 : i32 to vector<32x1xi32>
    %9 = arith.cmpi slt, %5, %8 : vector<32x1xi32>
    %c0_i32_3 = arith.constant 0 : i32
    %10 = arith.cmpi slt, %3, %c0_i32_3 : i32
    %11 = vector.broadcast %10 : i1 to vector<32x1xi1>
    %12 = vector.broadcast %11 : vector<32x1xi1> to vector<32x1xi1>
    %13 = arith.xori %9, %12 : vector<32x1xi1>
    %14 = arith.andi %13, %7 : vector<32x1xi1>
    %15 = vector.broadcast %3 : i32 to vector<32x1xi32>
    %16 = arith.addi %5, %15 : vector<32x1xi32>
    %17 = arith.select %14, %16, %5 : vector<32x1xi1>, vector<32x1xi32>
    %c0_i32_4 = arith.constant 0 : i32
    %18 = vector.broadcast %c0_i32_4 : i32 to vector<32x1xi32>
    %19 = arith.cmpi ne, %17, %18 : vector<32x1xi32>
    %20 = arith.extui %19 : vector<32x1xi1> to vector<32x1xi32>
    %21 = arith.sitofp %20 : vector<32x1xi32> to vector<32x1xf32>
    %c15_i32 = arith.constant 15 : i32
    %22 = vector.broadcast %c15_i32 : i32 to vector<32x1xi32>
    %23 = arith.cmpi ne, %17, %22 : vector<32x1xi32>
    %24 = arith.extui %23 : vector<32x1xi1> to vector<32x1xi32>
    %25 = arith.sitofp %24 : vector<32x1xi32> to vector<32x1xf32>
    %c1_i32_5 = arith.constant 1 : i32
    %26 = tpu.dynamic_rotate %0 by %c1_i32_5 dim 0 : vector<32x64xf32>, i32 -> vector<32x64xf32>
    %27 = vector.broadcast %21 : vector<32x1xf32> to vector<32x64xf32>
    %28 = arith.mulf %26, %27 : vector<32x64xf32>
    %c31_i32 = arith.constant 31 : i32
    %29 = tpu.dynamic_rotate %0 by %c31_i32 dim 0 : vector<32x64xf32>, i32 -> vector<32x64xf32>
    %30 = vector.broadcast %25 : vector<32x1xf32> to vector<32x64xf32>
    %31 = arith.mulf %29, %30 : vector<32x64xf32>
    %c0_6 = arith.constant 0 : index
    %c0_7 = arith.constant 0 : index
    %c0_8 = arith.constant 0 : index
    %32 = vector.load %arg2[%c0_6, %c0_7, %c0_8] : memref<3x64x64xf32, #tpu.memory_space<vmem>>, vector<1x64x64xf32>
    %33 = vector.shape_cast %32 : vector<1x64x64xf32> to vector<64x64xf32>
    %cst = arith.constant dense<0.000000e+00> : vector<32x64xf32>
    %34 = tpu.matmul %28, %33, %cst {dimension_numbers = #tpu.dot_dimension_numbers<[1], [0], [0], [1], [0, 0, 1, 1], [], []>} : vector<32x64xf32>, vector<64x64xf32>, vector<32x64xf32> -> vector<32x64xf32>
    %c1 = arith.constant 1 : index
    %c0_9 = arith.constant 0 : index
    %c0_10 = arith.constant 0 : index
    %35 = vector.load %arg2[%c1, %c0_9, %c0_10] : memref<3x64x64xf32, #tpu.memory_space<vmem>>, vector<1x64x64xf32>
    %36 = vector.shape_cast %35 : vector<1x64x64xf32> to vector<64x64xf32>
    %cst_11 = arith.constant dense<0.000000e+00> : vector<32x64xf32>
    %37 = tpu.matmul %0, %36, %cst_11 {dimension_numbers = #tpu.dot_dimension_numbers<[1], [0], [0], [1], [0, 0, 1, 1], [], []>} : vector<32x64xf32>, vector<64x64xf32>, vector<32x64xf32> -> vector<32x64xf32>
    %38 = arith.addf %34, %37 : vector<32x64xf32>
    %c2 = arith.constant 2 : index
    %c0_12 = arith.constant 0 : index
    %c0_13 = arith.constant 0 : index
    %39 = vector.load %arg2[%c2, %c0_12, %c0_13] : memref<3x64x64xf32, #tpu.memory_space<vmem>>, vector<1x64x64xf32>
    %40 = vector.shape_cast %39 : vector<1x64x64xf32> to vector<64x64xf32>
    %cst_14 = arith.constant dense<0.000000e+00> : vector<32x64xf32>
    %41 = tpu.matmul %31, %40, %cst_14 {dimension_numbers = #tpu.dot_dimension_numbers<[1], [0], [0], [1], [0, 0, 1, 1], [], []>} : vector<32x64xf32>, vector<64x64xf32>, vector<32x64xf32> -> vector<32x64xf32>
    %42 = arith.addf %38, %41 : vector<32x64xf32>
    %c0_15 = arith.constant 0 : index
    %c0_16 = arith.constant 0 : index
    %43 = vector.load %arg3[%c0_15, %c0_16] : memref<32x64xf32, #tpu.memory_space<vmem>>, vector<32x64xf32>
    tpu.vector_store %arg3[%c0_15, %c0_16], %42 {strides = array<i32>} : memref<32x64xf32, #tpu.memory_space<vmem>>, vector<32x64xf32>,
    %cst_17 = arith.constant dense<0.000000e+00> : vector<64xf32>
    %44 = vector.multi_reduction <add>, %42, %cst_17 [0] : vector<32x64xf32> to vector<64xf32>
    %45 = vector.shape_cast %44 : vector<64xf32> to vector<1x64xf32>
    %46 = arith.mulf %42, %42 : vector<32x64xf32>
    %cst_18 = arith.constant dense<0.000000e+00> : vector<64xf32>
    %47 = vector.multi_reduction <add>, %46, %cst_18 [0] : vector<32x64xf32> to vector<64xf32>
    %48 = vector.shape_cast %47 : vector<64xf32> to vector<1x64xf32>
    %49 = tpu.concatenate %45, %48 in 0 : vector<1x64xf32>, vector<1x64xf32> -> vector<2x64xf32>
    %c0_19 = arith.constant 0 : index
    %c0_20 = arith.constant 0 : index
    %c0_21 = arith.constant 0 : index
    %50 = vector.load %arg4[%c0_19, %c0_20, %c0_21] : memref<1x2x64xf32, #tpu.memory_space<vmem>>, vector<1x2x64xf32>
    %51 = vector.shape_cast %50 : vector<1x2x64xf32> to vector<2x64xf32>
    %52 = vector.shape_cast %49 : vector<2x64xf32> to vector<1x2x64xf32>
    tpu.vector_store %arg4[%c0_19, %c0_20, %c0_21], %52 {strides = array<i32>} : memref<1x2x64xf32, #tpu.memory_space<vmem>>, vector<1x2x64xf32>,
    return
  }
  func.func @transform_0(%arg0: i32) -> (i32, i32) {
    %c0_i32 = arith.constant 0 : i32
    %c0_i32_0 = arith.constant 0 : i32
    return %arg0, %c0_i32 : i32, i32
  }
  func.func @transform_1(%arg0: i32) -> (i32, i32, i32) {
    %c0_i32 = arith.constant 0 : i32
    %c0_i32_0 = arith.constant 0 : i32
    %c0_i32_1 = arith.constant 0 : i32
    %c0_i32_2 = arith.constant 0 : i32
    return %c0_i32, %c0_i32_0, %c0_i32_1 : i32, i32, i32
  }
  func.func @transform_2(%arg0: i32) -> (i32, i32) {
    %c0_i32 = arith.constant 0 : i32
    %c0_i32_0 = arith.constant 0 : i32
    return %arg0, %c0_i32 : i32, i32
  }
  func.func @transform_3(%arg0: i32) -> (i32, i32, i32) {
    %c0_i32 = arith.constant 0 : i32
    %c0_i32_0 = arith.constant 0 : i32
    %c0_i32_1 = arith.constant 0 : i32
    return %arg0, %c0_i32, %c0_i32_0 : i32, i32, i32
  }
}

module attributes {stable_mosaic.version = 11 : i64} {
  func.func @_conv_bn_stats_kernel(%arg0: i32, %arg1: memref<32x64xf32, #tpu.memory_space<vmem>>, %arg2: memref<3x64x64xf32, #tpu.memory_space<vmem>>, %arg3: memref<1x64xf32, #tpu.memory_space<vmem>>, %arg4: memref<1x64xf32, #tpu.memory_space<vmem>>, %arg5: memref<32x64xf32, #tpu.memory_space<vmem>>, %arg6: memref<1x2x64xf32, #tpu.memory_space<vmem>>) attributes {dimension_semantics = [#tpu.dimension_semantics<parallel>], iteration_bounds = array<i64: 1>, scalar_prefetch = 0 : i64, scratch_operands = 0 : i64, tpu.core_type = #tpu.core_type<tc>, window_params = [{transform_indices = @transform_0, window_bounds = array<i64: 32, 64>}, {pipeline_mode = #tpu.pipeline_mode<synchronous>, transform_indices = @transform_1, window_bounds = array<i64: 3, 64, 64>}, {pipeline_mode = #tpu.pipeline_mode<synchronous>, transform_indices = @transform_2, window_bounds = array<i64: 1, 64>}, {pipeline_mode = #tpu.pipeline_mode<synchronous>, transform_indices = @transform_3, window_bounds = array<i64: 1, 64>}, {transform_indices = @transform_4, window_bounds = array<i64: 32, 64>}, {transform_indices = @transform_5, window_bounds = array<i64: 1, 2, 64>}]} {
    %c0 = arith.constant 0 : index
    %c0_0 = arith.constant 0 : index
    %0 = vector.load %arg1[%c0, %c0_0] : memref<32x64xf32, #tpu.memory_space<vmem>>, vector<32x64xf32>
    %c0_1 = arith.constant 0 : index
    %c0_2 = arith.constant 0 : index
    %1 = vector.load %arg3[%c0_1, %c0_2] : memref<1x64xf32, #tpu.memory_space<vmem>>, vector<1x64xf32>
    %2 = vector.broadcast %1 : vector<1x64xf32> to vector<32x64xf32>
    %3 = arith.mulf %0, %2 : vector<32x64xf32>
    %c0_3 = arith.constant 0 : index
    %c0_4 = arith.constant 0 : index
    %4 = vector.load %arg4[%c0_3, %c0_4] : memref<1x64xf32, #tpu.memory_space<vmem>>, vector<1x64xf32>
    %5 = vector.broadcast %4 : vector<1x64xf32> to vector<32x64xf32>
    %6 = arith.addf %3, %5 : vector<32x64xf32>
    %cst = arith.constant 0.000000e+00 : f32
    %7 = vector.broadcast %cst : f32 to vector<32x64xf32>
    %8 = arith.cmpf ogt, %6, %7 : vector<32x64xf32>
    %cst_5 = arith.constant 2.000000e-01 : f32
    %9 = vector.broadcast %cst_5 : f32 to vector<32x64xf32>
    %10 = arith.mulf %9, %6 : vector<32x64xf32>
    %11 = arith.select %8, %6, %10 : vector<32x64xi1>, vector<32x64xf32>
    %12 = tpu.iota {dimensions = array<i32: 0>} : vector<32x1xi32>
    %c16_i32 = arith.constant 16 : i32
    %c0_i32 = arith.constant 0 : i32
    %13 = arith.cmpi eq, %c16_i32, %c0_i32 : i32
    %c1_i32 = arith.constant 1 : i32
    %14 = arith.select %13, %c1_i32, %c16_i32 : i32
    %15 = vector.broadcast %14 : i32 to vector<32x1xi32>
    %16 = arith.remsi %12, %15 : vector<32x1xi32>
    %c0_i32_6 = arith.constant 0 : i32
    %17 = vector.broadcast %c0_i32_6 : i32 to vector<32x1xi32>
    %18 = arith.cmpi ne, %16, %17 : vector<32x1xi32>
    %c0_i32_7 = arith.constant 0 : i32
    %19 = vector.broadcast %c0_i32_7 : i32 to vector<32x1xi32>
    %20 = arith.cmpi slt, %16, %19 : vector<32x1xi32>
    %c0_i32_8 = arith.constant 0 : i32
    %21 = arith.cmpi slt, %14, %c0_i32_8 : i32
    %22 = vector.broadcast %21 : i1 to vector<32x1xi1>
    %23 = vector.broadcast %22 : vector<32x1xi1> to vector<32x1xi1>
    %24 = arith.xori %20, %23 : vector<32x1xi1>
    %25 = arith.andi %24, %18 : vector<32x1xi1>
    %26 = vector.broadcast %14 : i32 to vector<32x1xi32>
    %27 = arith.addi %16, %26 : vector<32x1xi32>
    %28 = arith.select %25, %27, %16 : vector<32x1xi1>, vector<32x1xi32>
    %c0_i32_9 = arith.constant 0 : i32
    %29 = vector.broadcast %c0_i32_9 : i32 to vector<32x1xi32>
    %30 = arith.cmpi ne, %28, %29 : vector<32x1xi32>
    %31 = arith.extui %30 : vector<32x1xi1> to vector<32x1xi32>
    %32 = arith.sitofp %31 : vector<32x1xi32> to vector<32x1xf32>
    %c15_i32 = arith.constant 15 : i32
    %33 = vector.broadcast %c15_i32 : i32 to vector<32x1xi32>
    %34 = arith.cmpi ne, %28, %33 : vector<32x1xi32>
    %35 = arith.extui %34 : vector<32x1xi1> to vector<32x1xi32>
    %36 = arith.sitofp %35 : vector<32x1xi32> to vector<32x1xf32>
    %c1_i32_10 = arith.constant 1 : i32
    %37 = tpu.dynamic_rotate %11 by %c1_i32_10 dim 0 : vector<32x64xf32>, i32 -> vector<32x64xf32>
    %38 = vector.broadcast %32 : vector<32x1xf32> to vector<32x64xf32>
    %39 = arith.mulf %37, %38 : vector<32x64xf32>
    %c31_i32 = arith.constant 31 : i32
    %40 = tpu.dynamic_rotate %11 by %c31_i32 dim 0 : vector<32x64xf32>, i32 -> vector<32x64xf32>
    %41 = vector.broadcast %36 : vector<32x1xf32> to vector<32x64xf32>
    %42 = arith.mulf %40, %41 : vector<32x64xf32>
    %c0_11 = arith.constant 0 : index
    %c0_12 = arith.constant 0 : index
    %c0_13 = arith.constant 0 : index
    %43 = vector.load %arg2[%c0_11, %c0_12, %c0_13] : memref<3x64x64xf32, #tpu.memory_space<vmem>>, vector<1x64x64xf32>
    %44 = vector.shape_cast %43 : vector<1x64x64xf32> to vector<64x64xf32>
    %cst_14 = arith.constant dense<0.000000e+00> : vector<32x64xf32>
    %45 = tpu.matmul %39, %44, %cst_14 {dimension_numbers = #tpu.dot_dimension_numbers<[1], [0], [0], [1], [0, 0, 1, 1], [], []>} : vector<32x64xf32>, vector<64x64xf32>, vector<32x64xf32> -> vector<32x64xf32>
    %c1 = arith.constant 1 : index
    %c0_15 = arith.constant 0 : index
    %c0_16 = arith.constant 0 : index
    %46 = vector.load %arg2[%c1, %c0_15, %c0_16] : memref<3x64x64xf32, #tpu.memory_space<vmem>>, vector<1x64x64xf32>
    %47 = vector.shape_cast %46 : vector<1x64x64xf32> to vector<64x64xf32>
    %cst_17 = arith.constant dense<0.000000e+00> : vector<32x64xf32>
    %48 = tpu.matmul %11, %47, %cst_17 {dimension_numbers = #tpu.dot_dimension_numbers<[1], [0], [0], [1], [0, 0, 1, 1], [], []>} : vector<32x64xf32>, vector<64x64xf32>, vector<32x64xf32> -> vector<32x64xf32>
    %49 = arith.addf %45, %48 : vector<32x64xf32>
    %c2 = arith.constant 2 : index
    %c0_18 = arith.constant 0 : index
    %c0_19 = arith.constant 0 : index
    %50 = vector.load %arg2[%c2, %c0_18, %c0_19] : memref<3x64x64xf32, #tpu.memory_space<vmem>>, vector<1x64x64xf32>
    %51 = vector.shape_cast %50 : vector<1x64x64xf32> to vector<64x64xf32>
    %cst_20 = arith.constant dense<0.000000e+00> : vector<32x64xf32>
    %52 = tpu.matmul %42, %51, %cst_20 {dimension_numbers = #tpu.dot_dimension_numbers<[1], [0], [0], [1], [0, 0, 1, 1], [], []>} : vector<32x64xf32>, vector<64x64xf32>, vector<32x64xf32> -> vector<32x64xf32>
    %53 = arith.addf %49, %52 : vector<32x64xf32>
    %c0_21 = arith.constant 0 : index
    %c0_22 = arith.constant 0 : index
    %54 = vector.load %arg5[%c0_21, %c0_22] : memref<32x64xf32, #tpu.memory_space<vmem>>, vector<32x64xf32>
    tpu.vector_store %arg5[%c0_21, %c0_22], %53 {strides = array<i32>} : memref<32x64xf32, #tpu.memory_space<vmem>>, vector<32x64xf32>,
    %cst_23 = arith.constant dense<0.000000e+00> : vector<64xf32>
    %55 = vector.multi_reduction <add>, %53, %cst_23 [0] : vector<32x64xf32> to vector<64xf32>
    %56 = vector.shape_cast %55 : vector<64xf32> to vector<1x64xf32>
    %57 = arith.mulf %53, %53 : vector<32x64xf32>
    %cst_24 = arith.constant dense<0.000000e+00> : vector<64xf32>
    %58 = vector.multi_reduction <add>, %57, %cst_24 [0] : vector<32x64xf32> to vector<64xf32>
    %59 = vector.shape_cast %58 : vector<64xf32> to vector<1x64xf32>
    %60 = tpu.concatenate %56, %59 in 0 : vector<1x64xf32>, vector<1x64xf32> -> vector<2x64xf32>
    %c0_25 = arith.constant 0 : index
    %c0_26 = arith.constant 0 : index
    %c0_27 = arith.constant 0 : index
    %61 = vector.load %arg6[%c0_25, %c0_26, %c0_27] : memref<1x2x64xf32, #tpu.memory_space<vmem>>, vector<1x2x64xf32>
    %62 = vector.shape_cast %61 : vector<1x2x64xf32> to vector<2x64xf32>
    %63 = vector.shape_cast %60 : vector<2x64xf32> to vector<1x2x64xf32>
    tpu.vector_store %arg6[%c0_25, %c0_26, %c0_27], %63 {strides = array<i32>} : memref<1x2x64xf32, #tpu.memory_space<vmem>>, vector<1x2x64xf32>,
    return
  }
  func.func @transform_0(%arg0: i32) -> (i32, i32) {
    %c0_i32 = arith.constant 0 : i32
    %c0_i32_0 = arith.constant 0 : i32
    return %arg0, %c0_i32 : i32, i32
  }
  func.func @transform_1(%arg0: i32) -> (i32, i32, i32) {
    %c0_i32 = arith.constant 0 : i32
    %c0_i32_0 = arith.constant 0 : i32
    %c0_i32_1 = arith.constant 0 : i32
    %c0_i32_2 = arith.constant 0 : i32
    return %c0_i32, %c0_i32_0, %c0_i32_1 : i32, i32, i32
  }
  func.func @transform_2(%arg0: i32) -> (i32, i32) {
    %c0_i32 = arith.constant 0 : i32
    %c0_i32_0 = arith.constant 0 : i32
    %c0_i32_1 = arith.constant 0 : i32
    return %c0_i32, %c0_i32_0 : i32, i32
  }
  func.func @transform_3(%arg0: i32) -> (i32, i32) {
    %c0_i32 = arith.constant 0 : i32
    %c0_i32_0 = arith.constant 0 : i32
    %c0_i32_1 = arith.constant 0 : i32
    return %c0_i32, %c0_i32_0 : i32, i32
  }
  func.func @transform_4(%arg0: i32) -> (i32, i32) {
    %c0_i32 = arith.constant 0 : i32
    %c0_i32_0 = arith.constant 0 : i32
    return %arg0, %c0_i32 : i32, i32
  }
  func.func @transform_5(%arg0: i32) -> (i32, i32, i32) {
    %c0_i32 = arith.constant 0 : i32
    %c0_i32_0 = arith.constant 0 : i32
    %c0_i32_1 = arith.constant 0 : i32
    return %arg0, %c0_i32, %c0_i32_0 : i32, i32, i32
  }
}

module attributes {stable_mosaic.version = 11 : i64} {
  func.func @_bn_residual_act_kernel(%arg0: i32, %arg1: memref<16x128xf32, #tpu.memory_space<vmem>>, %arg2: memref<16x128xf32, #tpu.memory_space<vmem>>, %arg3: memref<1x128xf32, #tpu.memory_space<vmem>>, %arg4: memref<1x128xf32, #tpu.memory_space<vmem>>, %arg5: memref<16x128xf32, #tpu.memory_space<vmem>>) attributes {dimension_semantics = [#tpu.dimension_semantics<parallel>], iteration_bounds = array<i64: 1>, scalar_prefetch = 0 : i64, scratch_operands = 0 : i64, tpu.core_type = #tpu.core_type<tc>, window_params = [{transform_indices = @transform_0, window_bounds = array<i64: 16, 128>}, {transform_indices = @transform_1, window_bounds = array<i64: 16, 128>}, {pipeline_mode = #tpu.pipeline_mode<synchronous>, transform_indices = @transform_2, window_bounds = array<i64: 1, 128>}, {pipeline_mode = #tpu.pipeline_mode<synchronous>, transform_indices = @transform_3, window_bounds = array<i64: 1, 128>}, {transform_indices = @transform_4, window_bounds = array<i64: 16, 128>}]} {
    %c0 = arith.constant 0 : index
    %c0_0 = arith.constant 0 : index
    %0 = vector.load %arg1[%c0, %c0_0] : memref<16x128xf32, #tpu.memory_space<vmem>>, vector<16x128xf32>
    %c0_1 = arith.constant 0 : index
    %c0_2 = arith.constant 0 : index
    %1 = vector.load %arg3[%c0_1, %c0_2] : memref<1x128xf32, #tpu.memory_space<vmem>>, vector<1x128xf32>
    %2 = vector.broadcast %1 : vector<1x128xf32> to vector<16x128xf32>
    %3 = arith.mulf %0, %2 : vector<16x128xf32>
    %c0_3 = arith.constant 0 : index
    %c0_4 = arith.constant 0 : index
    %4 = vector.load %arg4[%c0_3, %c0_4] : memref<1x128xf32, #tpu.memory_space<vmem>>, vector<1x128xf32>
    %5 = vector.broadcast %4 : vector<1x128xf32> to vector<16x128xf32>
    %6 = arith.addf %3, %5 : vector<16x128xf32>
    %c0_5 = arith.constant 0 : index
    %c0_6 = arith.constant 0 : index
    %7 = vector.load %arg2[%c0_5, %c0_6] : memref<16x128xf32, #tpu.memory_space<vmem>>, vector<16x128xf32>
    %8 = arith.addf %6, %7 : vector<16x128xf32>
    %cst = arith.constant 0.000000e+00 : f32
    %9 = vector.broadcast %cst : f32 to vector<16x128xf32>
    %10 = arith.cmpf ogt, %8, %9 : vector<16x128xf32>
    %cst_7 = arith.constant 2.000000e-01 : f32
    %11 = vector.broadcast %cst_7 : f32 to vector<16x128xf32>
    %12 = arith.mulf %11, %8 : vector<16x128xf32>
    %13 = arith.select %10, %8, %12 : vector<16x128xi1>, vector<16x128xf32>
    %c0_8 = arith.constant 0 : index
    %c0_9 = arith.constant 0 : index
    %14 = vector.load %arg5[%c0_8, %c0_9] : memref<16x128xf32, #tpu.memory_space<vmem>>, vector<16x128xf32>
    tpu.vector_store %arg5[%c0_8, %c0_9], %13 {strides = array<i32>} : memref<16x128xf32, #tpu.memory_space<vmem>>, vector<16x128xf32>,
    return
  }
  func.func @transform_0(%arg0: i32) -> (i32, i32) {
    %c0_i32 = arith.constant 0 : i32
    %c0_i32_0 = arith.constant 0 : i32
    return %arg0, %c0_i32 : i32, i32
  }
  func.func @transform_1(%arg0: i32) -> (i32, i32) {
    %c0_i32 = arith.constant 0 : i32
    %c0_i32_0 = arith.constant 0 : i32
    return %arg0, %c0_i32 : i32, i32
  }
  func.func @transform_2(%arg0: i32) -> (i32, i32) {
    %c0_i32 = arith.constant 0 : i32
    %c0_i32_0 = arith.constant 0 : i32
    %c0_i32_1 = arith.constant 0 : i32
    return %c0_i32, %c0_i32_0 : i32, i32
  }
  func.func @transform_3(%arg0: i32) -> (i32, i32) {
    %c0_i32 = arith.constant 0 : i32
    %c0_i32_0 = arith.constant 0 : i32
    %c0_i32_1 = arith.constant 0 : i32
    return %c0_i32, %c0_i32_0 : i32, i32
  }
  func.func @transform_4(%arg0: i32) -> (i32, i32) {
    %c0_i32 = arith.constant 0 : i32
    %c0_i32_0 = arith.constant 0 : i32
    return %arg0, %c0_i32 : i32, i32
  }
}

</mosaic_0001>

<bundles_post_ra>
// kernel: tile.31
= control target key start
LH: loop header
LB: loop body
LE: loop exit
PB: predicated region body
PF: predicated region fallthrough
CT: control target
= control target key end

     0   :  { %s28_s0 = inlined_call_operand.vmem [shape: f32[4], index: 0, kind: input, shape index: {}]   ;;  %s29_s1 = inlined_call_operand.vmem [shape: f32[16,4], index: 1, kind: output, shape index: {}]  }
   0x1   :  { %v4_v0 = vld [vmem:[%s28_s0] ss:$0 sm:$0xff] }
   0x2   :  { %5 = vst [vmem:[%s29_s1] sm:$0xff] %v4_v0  ;;  %8 = vst [vmem:[%s29_s1 + $0x8] sm:$0xff] %v4_v0 }

// kernel: tile.32
= control target key start
LH: loop header
LB: loop body
LE: loop exit
PB: predicated region body
PF: predicated region fallthrough
CT: control target
= control target key end

     0   :  { %s131_s10 = smov 60   ;;  %s132_s11 = smov 52   ;;  %vm3_vm0 = vcmask 31744   ;;  %vm9_vm1 = vcmask 523744   ;;  %vm15_vm2 = vcmask 490944   ;;  %vm21_vm3 = vcmask 458144   ;;  %s207_s0 = inlined_call_operand.vmem [shape: f32[16,4], index: 0, kind: input, shape index: {}]   ;;  %s208_s1 = inlined_call_operand.vmem [shape: f32[1,64], index: 1, kind: output, shape index: {}]  }
   0x1   :  { %v101_v0 = vld [vmem:[%s207_s0 + $0xf] sm:$0x1]   ;;  %v103_v1 = vld [vmem:[%s207_s0 + $0xd] sm:$0x1]   ;;  %v102_v2 = vld [vmem:[%s207_s0 + $0xe] sm:$0x1]  }
   0x2   :  { %7 = vrot.lane.b32.xlu0 %v101_v0, %s131_s10  ;;  %19 = vrot.lane.b32.xlu1 %v103_v1, %s132_s11  ;;  %v104_v3 = vld [vmem:[%s207_s0 + $0xc] sm:$0x1]   ;;  %s133_s16 = smov 56   ;;  %s134_s17 = smov 48   ;;  %v105_v4 = vld [vmem:[%s207_s0 + $0xb] sm:$0x1]  }
   0x3   :  { %v106_v5 = vld [vmem:[%s207_s0 + $0xa] sm:$0x1]   ;;  %v2_v6 = vld [vmem:[%s207_s0] sm:$0x1]   ;;  %s135_s24 = smov 44   ;;  %s136_s25 = smov 40  }
   0x4   :  { %4 = vst.msk [vmem:[#allocation0] sm:$0x1] %vm3_vm0, %v2_v6   ;;  %v107_v7 = vld [vmem:[%s207_s0 + $0x9] sm:$0x1]   ;;  %v108_v8 = vld [vmem:[%s207_s0 + $0x8] sm:$0x1]  }
   0x5   :  { %s137_s30 = smov 36   ;;  %s138_s2 = smov 32   ;;  %v109_v9 = vld [vmem:[%s207_s0 + $0x7] sm:$0x1]   ;;  %v110_v10 = vld [vmem:[%s207_s0 + $0x6] sm:$0x1]  }
   0x6   :  { %13 = vrot.lane.b32.xlu0 %v102_v2, %s133_s16  ;;  %25 = vrot.lane.b32.xlu1 %v104_v3, %s134_s17  ;;  %s139_s7 = smov 28   ;;  %s140_s8 = smov 24   ;;  %v111_v11 = vld [vmem:[%s207_s0 + $0x5] sm:$0x1]   ;;  %v112_v12 = vld [vmem:[%s207_s0 + $0x4] sm:$0x1]  }
   0x7   :  { %s141_s13 = smov 20   ;;  %s142_s14 = smov 16   ;;  %v113_v13 = vld [vmem:[%s207_s0 + $0x3] sm:$0x1]   ;;  %v114_v14 = vld [vmem:[%s207_s0 + $0x2] sm:$0x1]  }
   0x8   :  { %s143_s19 = smov 12   ;;  %s144_s20 = smov 8   ;;  %v115_v15 = vld [vmem:[%s207_s0 + $0x1] sm:$0x1]   ;;  %vm27_vm4 = vcmask 425344   ;;  %vm33_vm5 = vcmask 392544  }
   0x9   :  { %s145_s0 = smov 4   ;;  %vm39_vm6 = vcmask 359744   ;;  %vm45_vm7 = vcmask 326944   ;;  %vm51_vm8 = vcmask 294144   ;;  %vm57_vm9 = vcmask 261344  }
   0xa   :  { %31 = vrot.lane.b32.xlu0 %v105_v4, %s135_s24  ;;  %37 = vrot.lane.b32.xlu1 %v106_v5, %s136_s25  ;;  %vm63_vm10 = vcmask 228544   ;;  %vm69_vm11 = vcmask 195744   ;;  %vm75_vm12 = vcmask 162944   ;;  %vm81_vm13 = vcmask 130144  }
   0xb   :  { %vm87_vm14 = vcmask 97344   ;;  %vm93_vm15 = vcmask 64544  }
   0xe   :  { %43 = vrot.lane.b32.xlu0 %v107_v7, %s137_s30  ;;  %49 = vrot.lane.b32.xlu1 %v108_v8, %s138_s2 }
  0x12   :  { %55 = vrot.lane.b32.xlu0 %v109_v9, %s139_s7  ;;  %61 = vrot.lane.b32.xlu1 %v110_v10, %s140_s8 }
  0x16   :  { %67 = vrot.lane.b32.xlu0 %v111_v11, %s141_s13  ;;  %73 = vrot.lane.b32.xlu1 %v112_v12, %s142_s14 }
  0x1a   :  { %79 = vrot.lane.b32.xlu0 %v113_v13, %s143_s19  ;;  %85 = vrot.lane.b32.xlu1 %v114_v14, %s144_s20 }
  0x1e   :  { %91 = vrot.lane.b32.xlu0 %v115_v15, %s145_s0 }
  0x74   :  { %v8_v16 = vpop.permute.xlu0 %7   ;;  %v20_v17 = vpop.permute.xlu1 %19  }
  0x75   :  { %10 = vst.msk [vmem:[#allocation0] sm:$0x1] %vm9_vm1, %v8_v16  }
  0x78   :  { %v14_v18 = vpop.permute.xlu0 %13   ;;  %v26_v19 = vpop.permute.xlu1 %25  }
  0x79   :  { %16 = vst.msk [vmem:[#allocation0] sm:$0x1] %vm15_vm2, %v14_v18  }
  0x7a   :  { %22 = vst.msk [vmem:[#allocation0] sm:$0x1] %vm21_vm3, %v20_v17  }
  0x7b   :  { %28 = vst.msk [vmem:[#allocation0] sm:$0x1] %vm27_vm4, %v26_v19  }
  0x7c   :  { %v32_v20 = vpop.permute.xlu0 %31   ;;  %v38_v21 = vpop.permute.xlu1 %37  }
  0x7d   :  { %34 = vst.msk [vmem:[#allocation0] sm:$0x1] %vm33_vm5, %v32_v20  }
  0x7e   :  { %40 = vst.msk [vmem:[#allocation0] sm:$0x1] %vm39_vm6, %v38_v21  }
  0x80   :  { %v44_v22 = vpop.permute.xlu0 %43   ;;  %v50_v23 = vpop.permute.xlu1 %49  }
  0x81   :  { %46 = vst.msk [vmem:[#allocation0] sm:$0x1] %vm45_vm7, %v44_v22  }
  0x82   :  { %52 = vst.msk [vmem:[#allocation0] sm:$0x1] %vm51_vm8, %v50_v23  }
  0x84   :  { %v56_v24 = vpop.permute.xlu0 %55   ;;  %v62_v25 = vpop.permute.xlu1 %61  }
  0x85   :  { %58 = vst.msk [vmem:[#allocation0] sm:$0x1] %vm57_vm9, %v56_v24  }
  0x86   :  { %64 = vst.msk [vmem:[#allocation0] sm:$0x1] %vm63_vm10, %v62_v25  }
  0x88   :  { %v68_v26 = vpop.permute.xlu0 %67   ;;  %v74_v27 = vpop.permute.xlu1 %73  }
  0x89   :  { %70 = vst.msk [vmem:[#allocation0] sm:$0x1] %vm69_vm11, %v68_v26  }
  0x8a   :  { %76 = vst.msk [vmem:[#allocation0] sm:$0x1] %vm75_vm12, %v74_v27  }
  0x8c   :  { %v80_v28 = vpop.permute.xlu0 %79   ;;  %v86_v29 = vpop.permute.xlu1 %85  }
  0x8d   :  { %82 = vst.msk [vmem:[#allocation0] sm:$0x1] %vm81_vm13, %v80_v28  }
  0x8e   :  { %88 = vst.msk [vmem:[#allocation0] sm:$0x1] %vm87_vm14, %v86_v29  }
  0x90   :  { %v92_v30 = vpop.permute.xlu0 %91  }
  0x91   :  { %94 = vst.msk [vmem:[#allocation0] sm:$0x1] %vm93_vm15, %v92_v30  }
  0x98   :  { %v98_v31 = vld [vmem:[#allocation0] sm:$0x1] }
  0x99   :  { %100 = vst [vmem:[%s208_s1] sm:$0x1] %v98_v31 }

// kernel: tile.48
= control target key start
LH: loop header
LB: loop body
LE: loop exit
PB: predicated region body
PF: predicated region fallthrough
CT: control target
= control target key end

     0   :  { %s131_s10 = smov 60   ;;  %s132_s11 = smov 52   ;;  %vm3_vm0 = vcmask 31744   ;;  %vm9_vm1 = vcmask 523744   ;;  %vm15_vm2 = vcmask 490944   ;;  %vm21_vm3 = vcmask 458144   ;;  %s207_s0 = inlined_call_operand.vmem [shape: f32[16,4], index: 0, kind: input, shape index: {}]   ;;  %s208_s1 = inlined_call_operand.vmem [shape: f32[64], index: 1, kind: output, shape index: {}]  }
   0x1   :  { %v101_v0 = vld [vmem:[%s207_s0 + $0xf] sm:$0x1]   ;;  %v103_v1 = vld [vmem:[%s207_s0 + $0xd] sm:$0x1]   ;;  %v102_v2 = vld [vmem:[%s207_s0 + $0xe] sm:$0x1]  }
   0x2   :  { %7 = vrot.lane.b32.xlu0 %v101_v0, %s131_s10  ;;  %19 = vrot.lane.b32.xlu1 %v103_v1, %s132_s11  ;;  %v104_v3 = vld [vmem:[%s207_s0 + $0xc] sm:$0x1]   ;;  %s133_s16 = smov 56   ;;  %s134_s17 = smov 48   ;;  %v105_v4 = vld [vmem:[%s207_s0 + $0xb] sm:$0x1]  }
   0x3   :  { %v106_v5 = vld [vmem:[%s207_s0 + $0xa] sm:$0x1]   ;;  %v2_v6 = vld [vmem:[%s207_s0] sm:$0x1]   ;;  %s135_s24 = smov 44   ;;  %s136_s25 = smov 40  }
   0x4   :  { %4 = vst.msk [vmem:[#allocation0] sm:$0x1] %vm3_vm0, %v2_v6   ;;  %v107_v7 = vld [vmem:[%s207_s0 + $0x9] sm:$0x1]   ;;  %v108_v8 = vld [vmem:[%s207_s0 + $0x8] sm:$0x1]  }
   0x5   :  { %s137_s30 = smov 36   ;;  %s138_s2 = smov 32   ;;  %v109_v9 = vld [vmem:[%s207_s0 + $0x7] sm:$0x1]   ;;  %v110_v10 = vld [vmem:[%s207_s0 + $0x6] sm:$0x1]  }
   0x6   :  { %13 = vrot.lane.b32.xlu0 %v102_v2, %s133_s16  ;;  %25 = vrot.lane.b32.xlu1 %v104_v3, %s134_s17  ;;  %s139_s7 = smov 28   ;;  %s140_s8 = smov 24   ;;  %v111_v11 = vld [vmem:[%s207_s0 + $0x5] sm:$0x1]   ;;  %v112_v12 = vld [vmem:[%s207_s0 + $0x4] sm:$0x1]  }
   0x7   :  { %s141_s13 = smov 20   ;;  %s142_s14 = smov 16   ;;  %v113_v13 = vld [vmem:[%s207_s0 + $0x3] sm:$0x1]   ;;  %v114_v14 = vld [vmem:[%s207_s0 + $0x2] sm:$0x1]  }
   0x8   :  { %s143_s19 = smov 12   ;;  %s144_s20 = smov 8   ;;  %v115_v15 = vld [vmem:[%s207_s0 + $0x1] sm:$0x1]   ;;  %vm27_vm4 = vcmask 425344   ;;  %vm33_vm5 = vcmask 392544  }
   0x9   :  { %s145_s0 = smov 4   ;;  %vm39_vm6 = vcmask 359744   ;;  %vm45_vm7 = vcmask 326944   ;;  %vm51_vm8 = vcmask 294144   ;;  %vm57_vm9 = vcmask 261344  }
   0xa   :  { %31 = vrot.lane.b32.xlu0 %v105_v4, %s135_s24  ;;  %37 = vrot.lane.b32.xlu1 %v106_v5, %s136_s25  ;;  %vm63_vm10 = vcmask 228544   ;;  %vm69_vm11 = vcmask 195744   ;;  %vm75_vm12 = vcmask 162944   ;;  %vm81_vm13 = vcmask 130144  }
   0xb   :  { %vm87_vm14 = vcmask 97344   ;;  %vm93_vm15 = vcmask 64544  }
   0xe   :  { %43 = vrot.lane.b32.xlu0 %v107_v7, %s137_s30  ;;  %49 = vrot.lane.b32.xlu1 %v108_v8, %s138_s2 }
  0x12   :  { %55 = vrot.lane.b32.xlu0 %v109_v9, %s139_s7  ;;  %61 = vrot.lane.b32.xlu1 %v110_v10, %s140_s8 }
  0x16   :  { %67 = vrot.lane.b32.xlu0 %v111_v11, %s141_s13  ;;  %73 = vrot.lane.b32.xlu1 %v112_v12, %s142_s14 }
  0x1a   :  { %79 = vrot.lane.b32.xlu0 %v113_v13, %s143_s19  ;;  %85 = vrot.lane.b32.xlu1 %v114_v14, %s144_s20 }
  0x1e   :  { %91 = vrot.lane.b32.xlu0 %v115_v15, %s145_s0 }
  0x74   :  { %v8_v16 = vpop.permute.xlu0 %7   ;;  %v20_v17 = vpop.permute.xlu1 %19  }
  0x75   :  { %10 = vst.msk [vmem:[#allocation0] sm:$0x1] %vm9_vm1, %v8_v16  }
  0x78   :  { %v14_v18 = vpop.permute.xlu0 %13   ;;  %v26_v19 = vpop.permute.xlu1 %25  }
  0x79   :  { %16 = vst.msk [vmem:[#allocation0] sm:$0x1] %vm15_vm2, %v14_v18  }
  0x7a   :  { %22 = vst.msk [vmem:[#allocation0] sm:$0x1] %vm21_vm3, %v20_v17  }
  0x7b   :  { %28 = vst.msk [vmem:[#allocation0] sm:$0x1] %vm27_vm4, %v26_v19  }
  0x7c   :  { %v32_v20 = vpop.permute.xlu0 %31   ;;  %v38_v21 = vpop.permute.xlu1 %37  }
  0x7d   :  { %34 = vst.msk [vmem:[#allocation0] sm:$0x1] %vm33_vm5, %v32_v20  }
  0x7e   :  { %40 = vst.msk [vmem:[#allocation0] sm:$0x1] %vm39_vm6, %v38_v21  }
  0x80   :  { %v44_v22 = vpop.permute.xlu0 %43   ;;  %v50_v23 = vpop.permute.xlu1 %49  }
  0x81   :  { %46 = vst.msk [vmem:[#allocation0] sm:$0x1] %vm45_vm7, %v44_v22  }
  0x82   :  { %52 = vst.msk [vmem:[#allocation0] sm:$0x1] %vm51_vm8, %v50_v23  }
  0x84   :  { %v56_v24 = vpop.permute.xlu0 %55   ;;  %v62_v25 = vpop.permute.xlu1 %61  }
  0x85   :  { %58 = vst.msk [vmem:[#allocation0] sm:$0x1] %vm57_vm9, %v56_v24  }
  0x86   :  { %64 = vst.msk [vmem:[#allocation0] sm:$0x1] %vm63_vm10, %v62_v25  }
  0x88   :  { %v68_v26 = vpop.permute.xlu0 %67   ;;  %v74_v27 = vpop.permute.xlu1 %73  }
  0x89   :  { %70 = vst.msk [vmem:[#allocation0] sm:$0x1] %vm69_vm11, %v68_v26  }
  0x8a   :  { %76 = vst.msk [vmem:[#allocation0] sm:$0x1] %vm75_vm12, %v74_v27  }
  0x8c   :  { %v80_v28 = vpop.permute.xlu0 %79   ;;  %v86_v29 = vpop.permute.xlu1 %85  }
  0x8d   :  { %82 = vst.msk [vmem:[#allocation0] sm:$0x1] %vm81_vm13, %v80_v28  }
  0x8e   :  { %88 = vst.msk [vmem:[#allocation0] sm:$0x1] %vm87_vm14, %v86_v29  }
  0x90   :  { %v92_v30 = vpop.permute.xlu0 %91  }
  0x91   :  { %94 = vst.msk [vmem:[#allocation0] sm:$0x1] %vm93_vm15, %v92_v30  }
  0x98   :  { %v98_v31 = vld [vmem:[#allocation0] sm:$0x1] }
  0x99   :  { %100 = vst [vmem:[%s208_s1] sm:$0x1] %v98_v31 }

// kernel: tile.49
= control target key start
LH: loop header
LB: loop body
LE: loop exit
PB: predicated region body
PF: predicated region fallthrough
CT: control target
= control target key end

     0   :  { %s22_s0 = inlined_call_operand.vmem [shape: f32[64], index: 0, kind: input, shape index: {}]   ;;  %s23_s1 = inlined_call_operand.vmem [shape: f32[2,64], index: 1, kind: output, shape index: {}]  }
   0x1   :  { %v4_v0 = vld [vmem:[%s22_s0] ss:$0 sm:$0xff] }
   0x2   :  { %5 = vst [vmem:[%s23_s1] sm:$0x3] %v4_v0 }

// kernel: tile.50
= control target key start
LH: loop header
LB: loop body
LE: loop exit
PB: predicated region body
PF: predicated region fallthrough
CT: control target
= control target key end

     0   :  { %vm7_vm0 = vcmask 523264   ;;  %vm13_vm1 = vcmask 1048064   ;;  %s39_s0 = inlined_call_operand.vmem [shape: f32[2,64], index: 0, kind: input, shape index: {}]   ;;  %s40_s1 = inlined_call_operand.vmem [shape: f32[1,128], index: 1, kind: output, shape index: {}]  }
   0x1   :  { %v4_v0 = vld [vmem:[%s39_s0] sm:$0x3]  ;;  %s22_s0 = smov 64  }
   0x2   :  { %5 = vst [vmem:[#allocation1] sm:$0x3] %v4_v0 }
   0x9   :  { %v10_v1 = vld [vmem:[#allocation1 + $0x1] sm:$0x1]   ;;  %v6_v2 = vld [vmem:[#allocation1] sm:$0x1]  }
   0xa   :  { %11 = vrot.lane.b32.xlu0 %v10_v1, %s22_s0  ;;  %8 = vst.msk [vmem:[#allocation0] sm:$0x1] %vm7_vm0, %v6_v2  }
  0x7c   :  { %v12_v3 = vpop.permute.xlu0 %11  }
  0x7d   :  { %14 = vst.msk [vmem:[#allocation0] sm:$0x1] %vm13_vm1, %v12_v3  }
  0x84   :  { %v18_v4 = vld [vmem:[#allocation0] sm:$0x1] }
  0x85   :  { %20 = vst [vmem:[%s40_s1] sm:$0x1] %v18_v4 }

// kernel: residual_block_d.3
= control target key start
LH: loop header
LB: loop body
LE: loop exit
PB: predicated region body
PF: predicated region fallthrough
CT: control target
= control target key end

     0   :  { %v17_v0 = vlaneseq  ;;  %vm137_vm0 = vcmask 523264   ;;  %v687_v29 = vmov 0.0   ;;  %vm476_vm7 = vcmask 1040384   ;;  %s879_s1 = inlined_call_operand.vmem [shape: f32[3,64,64], index: 1, kind: input, shape index: {}]   ;;  %s880_s0 = inlined_call_operand.vmem [shape: f32[32,64], index: 0, kind: input, shape index: {}]   ;;  %s881_s2 = inlined_call_operand.vmem [shape: f32[32,64], index: 2, kind: output, shape index: {0}]   ;;  %s882_s3 = inlined_call_operand.vmem [shape: f32[1,2,64], index: 3, kind: output, shape index: {1}]  }
   0x1   :  { %v492_v1 = vld [vmem:[%s879_s1 + $0x40] sm:$0xff]  ;;  %v493_v2 = vld [vmem:[%s879_s1 + $0x48] sm:$0xff]  ;;  %v494_v6 = vld [vmem:[%s879_s1 + $0x50] sm:$0xff]  ;;  %vm478_vm8 = vcmask 517120  }
   0x2   :  { %v120_v3 = vld [vmem:[%s879_s1] sm:$0xff]  ;;  %v622_v4 = vpack.c.bf16 %v493_v2, %v492_v1  ;;  %v121_v5 = vld [vmem:[%s879_s1 + $0x8] sm:$0xff]  ;;  %v495_v7 = vld [vmem:[%s879_s1 + $0x58] sm:$0xff]  ;;  %v726_v8 = vshrl.u32 %v17_v0, 7 }
   0x3   :  { %v638_v9 = vpack.c.bf16 %v121_v5, %v120_v3  ;;  %v626_v10 = vpack.c.bf16 %v495_v7, %v494_v6  ;;  %v122_v11 = vld [vmem:[%s879_s1 + $0x10] sm:$0xff]  ;;  %v123_v12 = vld [vmem:[%s879_s1 + $0x18] sm:$0xff]  ;;  %v496_v13 = vld [vmem:[%s879_s1 + $0x60] sm:$0xff] }
   0x4   :  { %623 = vmatprep.subr.bf16.mxu1 %v622_v4  ;;  %v642_v14 = vpack.c.bf16 %v123_v12, %v122_v11  ;;  %v497_v15 = vld [vmem:[%s879_s1 + $0x68] sm:$0xff]  ;;  %v124_v16 = vld [vmem:[%s879_s1 + $0x20] sm:$0xff]  ;;  %v26_v18 = vand.u32 15, %v726_v8  ;;  %v755_v21 = vld [vmem:[%s880_s0 + $0x18] sm:$0xff]  ;;  %vm98_vm2 = vcmp.lt.s32.totalorder %v726_v8, 1  ;;  %v20_v26 = vadd.s32 16, %v726_v8 }
   0x5   :  { %v125_v17 = vld [vmem:[%s879_s1 + $0x28] sm:$0xff]  ;;  %639 = vmatprep.subr.bf16.mxu0 %v638_v9  ;;  %625 = vmatpush3.bf16.msra.mxu1 %v622_v4  ;;  %v630_v19 = vpack.c.bf16 %v497_v15, %v496_v13  ;;  %v750_v20 = vld [vmem:[%s880_s0] sm:$0xff]  ;;  %v498_v23 = vld [vmem:[%s879_s1 + $0x70] sm:$0xff]  ;;  %v97_v31 = vrot.slane %v755_v21, 7  ;;  %v21_v48 = vadd.s32 24, %v726_v8  ;;  %v19_v51 = vadd.s32 8, %v726_v8 }
   0x6   :  { %641 = vmatpush3.bf16.msra.mxu0 %v638_v9  ;;  %627 = vmatprep.subr.bf16.mxu1 %v626_v10  ;;  %vm70_vm1 = vcmp.ne.s32.totalorder %v26_v18, 0  ;;  %v646_v22 = vpack.c.bf16 %v125_v17, %v124_v16  ;;  %v499_v24 = vld [vmem:[%s879_s1 + $0x78] sm:$0xff]  ;;  %v94_v25 = vrot.slane %v750_v20, 7  ;;  %v126_v27 = vld [vmem:[%s879_s1 + $0x30] sm:$0xff]  ;;  %v508_v37 = vld [vmem:[%s879_s1 + $0x80] sm:$0xff]  ;;  %v40_v40 = vand.u32 15, %v20_v26 }
   0x7   :  { %643 = vmatprep.subr.bf16.mxu0 %v642_v14  ;;  %572 = vmatprep.mubr.msk.f32.mxu1 %vm137_vm0, %v750_v20  ;;  %v127_v28 = vld [vmem:[%s879_s1 + $0x38] sm:$0xff]  ;;  %v488_v30 = vsel %vm70_vm1, 1.0, %v687_v29  ;;  %v634_v32 = vpack.c.bf16 %v499_v24, %v498_v23  ;;  %v781_v34 = vld [vmem:[%s880_s0 + $0x10] sm:$0xff]  ;;  %v509_v38 = vld [vmem:[%s879_s1 + $0x88] sm:$0xff]  ;;  %v107_v54 = vrot.slane %v750_v20, 1  ;;  %vm111_vm4 = vcmp.lt.s32.totalorder %v726_v8, 7 }
   0x8   :  { %v102_v33 = vsel %vm98_vm2, %v97_v31, %v94_v25  ;;  %v650_v35 = vpack.c.bf16 %v127_v28, %v126_v27  ;;  %v792_v39 = vld [vmem:[%s880_s0 + $0x8] sm:$0xff]  ;;  %v96_v41 = vrot.slane %v781_v34, 7  ;;  %v654_v42 = vpack.c.bf16 %v509_v38, %v508_v37  ;;  %v510_v44 = vld [vmem:[%s879_s1 + $0x90] sm:$0xff]  ;;  %v511_v45 = vld [vmem:[%s879_s1 + $0x98] sm:$0xff] }
   0x9   :  { %629 = vmatpush3.bf16.msra.mxu1 %v626_v10  ;;  %v103_v36 = vmul.f32 %v488_v30, %v102_v33  ;;  %v95_v43 = vrot.slane %v792_v39, 7  ;;  %vm72_vm3 = vcmp.ne.s32.totalorder %v40_v40, 0  ;;  %v658_v50 = vpack.c.bf16 %v511_v45, %v510_v44  ;;  %v512_v52 = vld [vmem:[%s879_s1 + $0xa0] sm:$0xff]  ;;  %v513_v53 = vld [vmem:[%s879_s1 + $0xa8] sm:$0xff]  ;;  %v514_v63 = vld [vmem:[%s879_s1 + $0xb0] sm:$0xff] }
   0xa   :  { %645 = vmatpush3.bf16.msra.mxu0 %v642_v14  ;;  %631 = vmatprep.subr.bf16.mxu1 %v630_v19  ;;  %v489_v46 = vsel %vm72_vm3, 1.0, %v687_v29  ;;  %v108_v55 = vrot.slane %v792_v39, 1  ;;  %v109_v57 = vrot.slane %v781_v34, 1  ;;  %v110_v58 = vrot.slane %v755_v21, 1  ;;  %v515_v0 = vld [vmem:[%s879_s1 + $0xb8] sm:$0xff] }
   0xb   :  { %647 = vmatprep.subr.bf16.mxu0 %v646_v22  ;;  %594 = vmatprep.mubr.msk.f32.mxu0 %vm137_vm0, %v103_v36  ;;  %v100_v47 = vsel %vm98_vm2, %v95_v43, %v96_v41  ;;  %v101_v49 = vsel %vm98_vm2, %v94_v25, %v95_v43  ;;  %v47_v59 = vand.u32 15, %v21_v48  ;;  %v662_v60 = vpack.c.bf16 %v513_v53, %v512_v52 }
   0xc   :  { %v105_v56 = vmul.f32 %v489_v46, %v100_v47  ;;  %v99_v61 = vsel %vm98_vm2, %v96_v41, %v97_v31  ;;  %v33_v62 = vand.u32 15, %v19_v51  ;;  %v114_v1 = vsel %vm111_vm4, %v107_v54, %v108_v55 }
   0xd   :  { %633 = vmatpush3.bf16.msra.mxu1 %v630_v19  ;;  %v112_v2 = vsel %vm111_vm4, %v109_v57, %v110_v58  ;;  %vm85_vm5 = vcmp.ne.s32.totalorder %v47_v59, 15  ;;  %v666_v3 = vpack.c.bf16 %v515_v0, %v514_v63  ;;  %v115_v5 = vsel %vm111_vm4, %v110_v58, %v107_v54 }
   0xe   :  { %649 = vmatpush3.bf16.msra.mxu0 %v646_v22  ;;  %635 = vmatprep.subr.bf16.mxu1 %v634_v32  ;;  %vm83_vm6 = vcmp.ne.s32.totalorder %v33_v62, 15  ;;  %v491_v4 = vsel %vm85_vm5, 1.0, %v687_v29  ;;  %v113_v7 = vsel %vm111_vm4, %v108_v55, %v109_v57 }
   0xf   :  { %651 = vmatprep.subr.bf16.mxu0 %v650_v35  ;;  %v490_v6 = vsel %vm83_vm6, 1.0, %v687_v29  ;;  %v119_v9 = vmul.f32 %v491_v4, %v115_v5 }
  0x10   :  { %v117_v10 = vmul.f32 %v490_v6, %v113_v7 }
  0x11   :  { %637 = vmatpush3.bf16.msra.mxu1 %v634_v32 }
  0x12   :  { %653 = vmatpush3.bf16.msra.mxu0 %v650_v35  ;;  %670 = vmatprep.subr.bf16.mxu1 %v654_v42 }
  0x13   :  { %655 = vmatprep.subr.bf16.mxu0 %v654_v42 }
  0x14   :  { %573 = vmatmul.mubr.msk.f32.vlgmr.msra.gmra.mrb[0].mxu1 %vm137_vm0, %v792_v39 }
  0x15   :  { %595 = vmatmul.mubr.msk.f32.vlgmr.msra.gmra.mrb[0].mxu0 %vm137_vm0, %v101_v49  ;;  %674 = vmatpush3.bf16.msra.mxu1 %v654_v42 }
  0x16   :  { %657 = vmatpush3.bf16.msra.mxu0 %v654_v42  ;;  %671 = vmatprep.subr.bf16.mxu1 %v658_v50 }
  0x17   :  { %659 = vmatprep.subr.bf16.mxu0 %v658_v50  ;;  %575 = vmatprep.mubr.msk.f32.mxu1 %vm137_vm0, %v781_v34 }
  0x18   :  { %597 = vmatprep.mubr.msk.f32.mxu0 %vm137_vm0, %v105_v56  ;;  %576 = vmatmul.mubr.msk.f32.gmra.mrb[2].mxu1 %vm137_vm0, %v755_v21 }
  0x19   :  { %675 = vmatpush3.bf16.msra.mxu1 %v658_v50  ;;  %598 = vmatmul.mubr.msk.f32.gmra.mrb[2].mxu0 %vm137_vm0, %v99_v61 }
  0x1a   :  { %661 = vmatpush3.bf16.msra.mxu0 %v658_v50  ;;  %672 = vmatprep.subr.bf16.mxu1 %v662_v60 }
  0x1b   :  { %663 = vmatprep.subr.bf16.mxu0 %v662_v60  ;;  %616 = vmatprep.mubr.msk.f32.mxu0 %vm137_vm0, %v114_v1 }
  0x1c   :  { %619 = vmatprep.mubr.msk.f32.mxu1 %vm137_vm0, %v112_v2 }
  0x1d   :  { %676 = vmatpush3.bf16.msra.mxu1 %v662_v60 }
  0x1e   :  { %665 = vmatpush3.bf16.msra.mxu0 %v662_v60  ;;  %673 = vmatprep.subr.bf16.mxu1 %v666_v3 }
  0x1f   :  { %667 = vmatprep.subr.bf16.mxu0 %v666_v3 }
  0x21   :  { %677 = vmatpush3.bf16.msra.mxu1 %v666_v3 }
  0x22   :  { %669 = vmatpush3.bf16.msra.mxu0 %v666_v3 }
  0x24   :  { %620 = vmatmul.mubr.msk.f32.vlgmr.msra.gmra.mrb[4].mxu1 %vm137_vm0, %v119_v9 }
  0x25   :  { %617 = vmatmul.mubr.msk.f32.vlgmr.msra.gmra.mrb[0].mxu0 %vm137_vm0, %v117_v10 }
  0xe7   :  { %v574_v11 = vpop.f32.mrb[0].mxu1 }
  0xe8   :  { %v216_v12 = vpop.f32.mrb[1].mxu1 }
  0xeb   :  { %v577_v13 = vpop.f32.mrb[2].mxu1 }
  0xec   :  { %v599_v14 = vpop.f32.mrb[2].mxu0  ;;  %v226_v15 = vpop.f32.mrb[3].mxu1 }
  0xed   :  { %v329_v16 = vadd.f32 %v599_v14, %v577_v13  ;;  %v323_v17 = vpop.f32.mrb[3].mxu0 }
  0xee   :  { %v324_v18 = vadd.f32 %v323_v17, %v226_v15 }
  0xf7   :  { %v621_v19 = vpop.f32.mrb[4].mxu1 }
  0xf8   :  { %v618_v8 = vpop.f32.mrb[0].mxu0  ;;  %v441_v20 = vadd.f32 %v621_v19, %v329_v16  ;;  %v429_v21 = vpop.f32.mrb[5].mxu1 }
  0xf9   :  { %v678_v22 = vadd.f32 %v618_v8, %v574_v11  ;;  %v419_v23 = vpop.f32.mrb[1].mxu0  ;;  %v440_v24 = vadd.f32 %v429_v21, %v324_v18 }
  0xfa   :  { %445 = vst.msk [vmem:[%s881_s2 + $0x18] sm:$0xff] %vm137_vm0, %v441_v20  ;;  %v679_v25 = vadd.f32 %v419_v23, %v216_v12  ;;  %v462_v33 = vmul.f32 %v441_v20, %v441_v20  ;;  %v451_v38 = vsel %vm137_vm0, %v441_v20, 0.0 }
  0xfb   :  { %443 = vst.msk [vmem:[%s881_s2 + $0x8] sm:$0xff] %vm137_vm0, %v678_v22  ;;  %v447_v26 = vsel %vm137_vm0, %v678_v22, 0.0  ;;  %v460_v27 = vmul.f32 %v678_v22, %v678_v22  ;;  %444 = vst.msk [vmem:[%s881_s2 + $0x10] sm:$0xff] %vm137_vm0, %v440_v24  ;;  %v461_v30 = vmul.f32 %v440_v24, %v440_v24  ;;  %v449_v35 = vsel %vm137_vm0, %v440_v24, 0.0 }
  0xfc   :  { %442 = vst.msk [vmem:[%s881_s2] sm:$0xff] %vm137_vm0, %v679_v25  ;;  %v446_v28 = vsel %vm137_vm0, %v679_v25, 0.0  ;;  %v459_v29 = vmul.f32 %v679_v25, %v679_v25  ;;  %v468_v42 = vsel %vm137_vm0, %v462_v33, 0.0 }
  0xfd   :  { %v464_v31 = vsel %vm137_vm0, %v460_v27, 0.0  ;;  %v448_v32 = vadd.f32 %v447_v26, %v446_v28  ;;  %v466_v39 = vsel %vm137_vm0, %v461_v30, 0.0 }
  0xfe   :  { %v463_v34 = vsel %vm137_vm0, %v459_v29, 0.0 }
  0xff   :  { %v465_v36 = vadd.f32 %v464_v31, %v463_v34  ;;  %v450_v37 = vadd.f32 %v449_v35, %v448_v32 }
 0x101   :  { %v452_v40 = vadd.f32 %v451_v38, %v450_v37  ;;  %v467_v41 = vadd.f32 %v466_v39, %v465_v36 }
 0x103   :  { %v453_v43 = vrot.slane %v452_v40, 4  ;;  %v469_v44 = vadd.f32 %v468_v42, %v467_v41 }
 0x105   :  { %v454_v45 = vadd.f32 %v453_v43, %v452_v40  ;;  %v470_v46 = vrot.slane %v469_v44, 4 }
 0x107   :  { %v455_v47 = vrot.slane %v454_v45, 2  ;;  %v471_v48 = vadd.f32 %v470_v46, %v469_v44 }
 0x109   :  { %v456_v49 = vadd.f32 %v455_v47, %v454_v45  ;;  %v472_v50 = vrot.slane %v471_v48, 2 }
 0x10b   :  { %v457_v51 = vrot.slane %v456_v49, 1  ;;  %v473_v52 = vadd.f32 %v472_v50, %v471_v48 }
 0x10d   :  { %v474_v53 = vrot.slane %v473_v52, 1  ;;  %v458_v54 = vadd.f32 %v457_v51, %v456_v49 }
 0x10f   :  { %v475_v55 = vadd.f32 %v474_v53, %v473_v52 }
 0x111   :  { %v477_v56 = vsel %vm476_vm7, %v458_v54, %v475_v55 }
 0x112   :  { %479 = vst.msk [vmem:[%s882_s3] sm:$0x3] %vm478_vm8, %v477_v56 }

// kernel: residual_block_d.4
= control target key start
LH: loop header
LB: loop body
LE: loop exit
PB: predicated region body
PF: predicated region fallthrough
CT: control target
= control target key end

     0   :  { %v57_v0 = vlaneseq  ;;  %vm177_vm0 = vcmask 523264   ;;  %v729_v48 = vmov 0.0   ;;  %vm516_vm11 = vcmask 1040384   ;;  %s939_s1 = inlined_call_operand.vmem [shape: f32[3,64,64], index: 1, kind: input, shape index: {}]   ;;  %s940_s0 = inlined_call_operand.vmem [shape: f32[32,64], index: 0, kind: input, shape index: {}]   ;;  %s941_s2 = inlined_call_operand.vmem [shape: f32[1,64], index: 2, kind: input, shape index: {}]   ;;  %s942_s3 = inlined_call_operand.vmem [shape: f32[1,64], index: 3, kind: input, shape index: {}]   ;;  %s943_s4 = inlined_call_operand.vmem [shape: f32[32,64], index: 4, kind: output, shape index: {0}]   ;;  %s944_s5 = inlined_call_operand.vmem [shape: f32[1,2,64], index: 5, kind: output, shape index: {1}]  }
   0x1   :  { %v534_v1 = vld [vmem:[%s939_s1 + $0x40] sm:$0xff]  ;;  %v535_v2 = vld [vmem:[%s939_s1 + $0x48] sm:$0xff]  ;;  %v536_v6 = vld [vmem:[%s939_s1 + $0x50] sm:$0xff]  ;;  %vm518_vm12 = vcmask 517120  }
   0x2   :  { %v160_v3 = vld [vmem:[%s939_s1] sm:$0xff]  ;;  %v664_v4 = vpack.c.bf16 %v535_v2, %v534_v1  ;;  %v161_v5 = vld [vmem:[%s939_s1 + $0x8] sm:$0xff]  ;;  %v537_v7 = vld [vmem:[%s939_s1 + $0x58] sm:$0xff]  ;;  %v778_v8 = vshrl.u32 %v57_v0, 7 }
   0x3   :  { %v680_v9 = vpack.c.bf16 %v161_v5, %v160_v3  ;;  %v668_v10 = vpack.c.bf16 %v537_v7, %v536_v6  ;;  %v162_v11 = vld [vmem:[%s939_s1 + $0x10] sm:$0xff]  ;;  %v163_v12 = vld [vmem:[%s939_s1 + $0x18] sm:$0xff]  ;;  %v538_v13 = vld [vmem:[%s939_s1 + $0x60] sm:$0xff] }
   0x4   :  { %665 = vmatprep.subr.bf16.mxu1 %v664_v4  ;;  %v684_v14 = vpack.c.bf16 %v163_v12, %v162_v11  ;;  %v539_v15 = vld [vmem:[%s939_s1 + $0x68] sm:$0xff]  ;;  %v164_v16 = vld [vmem:[%s939_s1 + $0x20] sm:$0xff]  ;;  %v540_v18 = vld [vmem:[%s939_s1 + $0x70] sm:$0xff]  ;;  %v66_v23 = vand.u32 15, %v778_v8  ;;  %v60_v24 = vadd.s32 16, %v778_v8  ;;  %vm138_vm4 = vcmp.lt.s32.totalorder %v778_v8, 1 }
   0x5   :  { %v165_v17 = vld [vmem:[%s939_s1 + $0x28] sm:$0xff]  ;;  %681 = vmatprep.subr.bf16.mxu0 %v680_v9  ;;  %667 = vmatpush3.bf16.msra.mxu1 %v664_v4  ;;  %v672_v19 = vpack.c.bf16 %v539_v15, %v538_v13  ;;  %v541_v20 = vld [vmem:[%s939_s1 + $0x78] sm:$0xff]  ;;  %v19_v21 = vld [vmem:[%s940_s0] sm:$0xff]  ;;  %v61_v60 = vadd.s32 24, %v778_v8  ;;  %v59_v5 = vadd.s32 8, %v778_v8  ;;  %vm151_vm8 = vcmp.lt.s32.totalorder %v778_v8, 7 }
   0x6   :  { %683 = vmatpush3.bf16.msra.mxu0 %v680_v9  ;;  %669 = vmatprep.subr.bf16.mxu1 %v668_v10  ;;  %v528_v22 = vld [vmem:[%s941_s2] ss:$0 sm:$0xff]  ;;  %v688_v25 = vpack.c.bf16 %v165_v17, %v164_v16  ;;  %v22_v28 = vld [vmem:[%s940_s0 + $0x18] sm:$0xff]  ;;  %v166_v29 = vld [vmem:[%s939_s1 + $0x30] sm:$0xff]  ;;  %v676_v33 = vpack.c.bf16 %v541_v20, %v540_v18  ;;  %vm827_vm1 = vcmp.ne.s32.totalorder %v66_v23, 0  ;;  %v80_v41 = vand.u32 15, %v60_v24 }
   0x7   :  { %685 = vmatprep.subr.bf16.mxu0 %v684_v14  ;;  %v30_v26 = vmul.f32 %v528_v22, %v19_v21  ;;  %v529_v27 = vld [vmem:[%s942_s3] ss:$0 sm:$0xff]  ;;  %v167_v30 = vld [vmem:[%s939_s1 + $0x38] sm:$0xff]  ;;  %v33_v31 = vmul.f32 %v528_v22, %v22_v28  ;;  %v20_v32 = vld [vmem:[%s940_s0 + $0x8] sm:$0xff]  ;;  %v530_v49 = vsel %vm827_vm1, 1.0, %v729_v48  ;;  %v87_v16 = vand.u32 15, %v61_v60 }
   0x8   :  { %v550_v37 = vld [vmem:[%s939_s1 + $0x80] sm:$0xff]  ;;  %v551_v38 = vld [vmem:[%s939_s1 + $0x88] sm:$0xff]  ;;  %v31_v39 = vmul.f32 %v528_v22, %v20_v32  ;;  %v21_v40 = vld [vmem:[%s940_s0 + $0x10] sm:$0xff]  ;;  %v692_v42 = vpack.c.bf16 %v167_v30, %v166_v29  ;;  %vm855_vm6 = vcmp.ne.s32.totalorder %v80_v41, 0 }
   0x9   :  { %671 = vmatpush3.bf16.msra.mxu1 %v668_v10  ;;  %v41_v34 = vadd.f32 %v529_v27, %v30_v26  ;;  %v44_v35 = vadd.f32 %v529_v27, %v33_v31  ;;  %v32_v44 = vmul.f32 %v528_v22, %v21_v40  ;;  %v696_v50 = vpack.c.bf16 %v551_v38, %v550_v37  ;;  %v552_v54 = vld [vmem:[%s939_s1 + $0x90] sm:$0xff]  ;;  %v553_v55 = vld [vmem:[%s939_s1 + $0x98] sm:$0xff]  ;;  %v554_v6 = vld [vmem:[%s939_s1 + $0xa0] sm:$0xff] }
   0xa   :  { %687 = vmatpush3.bf16.msra.mxu0 %v684_v14  ;;  %673 = vmatprep.subr.bf16.mxu1 %v672_v19  ;;  %v42_v46 = vadd.f32 %v529_v27, %v31_v39  ;;  %v700_v63 = vpack.c.bf16 %v553_v55, %v552_v54  ;;  %v531_v4 = vsel %vm855_vm6, 1.0, %v729_v48  ;;  %v555_v7 = vld [vmem:[%s939_s1 + $0xa8] sm:$0xff]  ;;  %v556_v20 = vld [vmem:[%s939_s1 + $0xb0] sm:$0xff]  ;;  %v557_v21 = vld [vmem:[%s939_s1 + $0xb8] sm:$0xff]  ;;  %vm125_vm9 = vcmp.ne.s32.totalorder %v87_v16, 15 }
   0xb   :  { %689 = vmatprep.subr.bf16.mxu0 %v688_v25  ;;  %vm45_vm2 = vcmp.gt.f32.partialorder %v41_v34, 0.0  ;;  %v49_v43 = vmul.f32 0.2, %v41_v34  ;;  %vm48_vm3 = vcmp.gt.f32.partialorder %v44_v35, 0.0  ;;  %v52_v45 = vmul.f32 0.2, %v44_v35 }
   0xc   :  { %v43_v51 = vadd.f32 %v529_v27, %v32_v44  ;;  %vm46_vm5 = vcmp.gt.f32.partialorder %v42_v46, 0.0  ;;  %v50_v58 = vmul.f32 0.2, %v42_v46  ;;  %v704_v17 = vpack.c.bf16 %v555_v7, %v554_v6 }
   0xd   :  { %675 = vmatpush3.bf16.msra.mxu1 %v672_v19  ;;  %v841_v47 = vsel %vm45_vm2, %v41_v34, %v49_v43  ;;  %v847_v53 = vsel %vm48_vm3, %v44_v35, %v52_v45  ;;  %v73_v19 = vand.u32 15, %v59_v5  ;;  %v708_v24 = vpack.c.bf16 %v557_v21, %v556_v20 }
   0xe   :  { %691 = vmatpush3.bf16.msra.mxu0 %v688_v25  ;;  %677 = vmatprep.subr.bf16.mxu1 %v676_v33  ;;  %v134_v52 = vrot.slane %v841_v47, 7  ;;  %v137_v57 = vrot.slane %v847_v53, 7  ;;  %vm47_vm7 = vcmp.gt.f32.partialorder %v43_v51, 0.0  ;;  %v51_v59 = vmul.f32 0.2, %v43_v51 }
   0xf   :  { %693 = vmatprep.subr.bf16.mxu0 %v692_v42  ;;  %614 = vmatprep.mubr.msk.f32.mxu1 %vm177_vm0, %v841_v47  ;;  %v54_v62 = vsel %vm46_vm5, %v42_v46, %v50_v58  ;;  %v147_v9 = vrot.slane %v841_v47, 1  ;;  %v150_v15 = vrot.slane %v847_v53, 1  ;;  %vm123_vm10 = vcmp.ne.s32.totalorder %v73_v19, 15 }
  0x10   :  { %v142_v61 = vsel %vm138_vm4, %v137_v57, %v134_v52  ;;  %v55_v0 = vsel %vm47_vm7, %v43_v51, %v51_v59  ;;  %v135_v2 = vrot.slane %v54_v62, 7  ;;  %v148_v10 = vrot.slane %v54_v62, 1 }
  0x11   :  { %679 = vmatpush3.bf16.msra.mxu1 %v676_v33  ;;  %v143_v1 = vmul.f32 %v530_v49, %v142_v61  ;;  %v136_v3 = vrot.slane %v55_v0, 7  ;;  %v149_v13 = vrot.slane %v55_v0, 1  ;;  %v533_v25 = vsel %vm125_vm9, 1.0, %v729_v48 }
  0x12   :  { %695 = vmatpush3.bf16.msra.mxu0 %v692_v42  ;;  %712 = vmatprep.subr.bf16.mxu1 %v696_v50  ;;  %v141_v11 = vsel %vm138_vm4, %v134_v52, %v135_v2  ;;  %v154_v22 = vsel %vm151_vm8, %v147_v9, %v148_v10  ;;  %v155_v26 = vsel %vm151_vm8, %v150_v15, %v147_v9  ;;  %v532_v27 = vsel %vm123_vm10, 1.0, %v729_v48 }
  0x13   :  { %697 = vmatprep.subr.bf16.mxu0 %v696_v50  ;;  %636 = vmatprep.mubr.msk.f32.mxu0 %vm177_vm0, %v143_v1  ;;  %v140_v12 = vsel %vm138_vm4, %v135_v2, %v136_v3  ;;  %v139_v18 = vsel %vm138_vm4, %v136_v3, %v137_v57  ;;  %v152_v23 = vsel %vm151_vm8, %v149_v13, %v150_v15 }
  0x14   :  { %615 = vmatmul.mubr.msk.f32.vlgmr.msra.gmra.mrb[0].mxu1 %vm177_vm0, %v54_v62  ;;  %v145_v14 = vmul.f32 %v531_v4, %v140_v12  ;;  %v153_v28 = vsel %vm151_vm8, %v148_v10, %v149_v13  ;;  %v159_v29 = vmul.f32 %v533_v25, %v155_v26 }
  0x15   :  { %637 = vmatmul.mubr.msk.f32.vlgmr.msra.gmra.mrb[0].mxu0 %vm177_vm0, %v141_v11  ;;  %716 = vmatpush3.bf16.msra.mxu1 %v696_v50  ;;  %v157_v30 = vmul.f32 %v532_v27, %v153_v28 }
  0x16   :  { %699 = vmatpush3.bf16.msra.mxu0 %v696_v50  ;;  %713 = vmatprep.subr.bf16.mxu1 %v700_v63 }
  0x17   :  { %701 = vmatprep.subr.bf16.mxu0 %v700_v63  ;;  %617 = vmatprep.mubr.msk.f32.mxu1 %vm177_vm0, %v55_v0 }
  0x18   :  { %639 = vmatprep.mubr.msk.f32.mxu0 %vm177_vm0, %v145_v14  ;;  %618 = vmatmul.mubr.msk.f32.gmra.mrb[2].mxu1 %vm177_vm0, %v847_v53 }
  0x19   :  { %717 = vmatpush3.bf16.msra.mxu1 %v700_v63  ;;  %640 = vmatmul.mubr.msk.f32.gmra.mrb[2].mxu0 %vm177_vm0, %v139_v18 }
  0x1a   :  { %703 = vmatpush3.bf16.msra.mxu0 %v700_v63  ;;  %714 = vmatprep.subr.bf16.mxu1 %v704_v17 }
  0x1b   :  { %705 = vmatprep.subr.bf16.mxu0 %v704_v17  ;;  %658 = vmatprep.mubr.msk.f32.mxu0 %vm177_vm0, %v154_v22 }
  0x1c   :  { %661 = vmatprep.mubr.msk.f32.mxu1 %vm177_vm0, %v152_v23 }
  0x1d   :  { %718 = vmatpush3.bf16.msra.mxu1 %v704_v17 }
  0x1e   :  { %707 = vmatpush3.bf16.msra.mxu0 %v704_v17  ;;  %715 = vmatprep.subr.bf16.mxu1 %v708_v24 }
  0x1f   :  { %709 = vmatprep.subr.bf16.mxu0 %v708_v24 }
  0x21   :  { %719 = vmatpush3.bf16.msra.mxu1 %v708_v24 }
  0x22   :  { %711 = vmatpush3.bf16.msra.mxu0 %v708_v24 }
  0x24   :  { %662 = vmatmul.mubr.msk.f32.vlgmr.msra.gmra.mrb[4].mxu1 %vm177_vm0, %v159_v29 }
  0x25   :  { %659 = vmatmul.mubr.msk.f32.vlgmr.msra.gmra.mrb[0].mxu0 %vm177_vm0, %v157_v30 }
  0xe7   :  { %v616_v31 = vpop.f32.mrb[0].mxu1 }
  0xe8   :  { %v256_v32 = vpop.f32.mrb[1].mxu1 }
  0xeb   :  { %v619_v33 = vpop.f32.mrb[2].mxu1 }
  0xec   :  { %v641_v34 = vpop.f32.mrb[2].mxu0  ;;  %v266_v35 = vpop.f32.mrb[3].mxu1 }
  0xed   :  { %v369_v36 = vadd.f32 %v641_v34, %v619_v33  ;;  %v363_v37 = vpop.f32.mrb[3].mxu0 }
  0xee   :  { %v364_v38 = vadd.f32 %v363_v37, %v266_v35 }
  0xf7   :  { %v663_v39 = vpop.f32.mrb[4].mxu1 }
  0xf8   :  { %v660_v8 = vpop.f32.mrb[0].mxu0  ;;  %v481_v40 = vadd.f32 %v663_v39, %v369_v36  ;;  %v469_v41 = vpop.f32.mrb[5].mxu1 }
  0xf9   :  { %v720_v42 = vadd.f32 %v660_v8, %v616_v31  ;;  %v459_v43 = vpop.f32.mrb[1].mxu0  ;;  %v480_v44 = vadd.f32 %v469_v41, %v364_v38 }
  0xfa   :  { %485 = vst.msk [vmem:[%s943_s4 + $0x18] sm:$0xff] %vm177_vm0, %v481_v40  ;;  %v721_v45 = vadd.f32 %v459_v43, %v256_v32  ;;  %v502_v53 = vmul.f32 %v481_v40, %v481_v40  ;;  %v491_v58 = vsel %vm177_vm0, %v481_v40, 0.0 }
  0xfb   :  { %483 = vst.msk [vmem:[%s943_s4 + $0x8] sm:$0xff] %vm177_vm0, %v720_v42  ;;  %v487_v46 = vsel %vm177_vm0, %v720_v42, 0.0  ;;  %v500_v47 = vmul.f32 %v720_v42, %v720_v42  ;;  %484 = vst.msk [vmem:[%s943_s4 + $0x10] sm:$0xff] %vm177_vm0, %v480_v44  ;;  %v501_v50 = vmul.f32 %v480_v44, %v480_v44  ;;  %v489_v55 = vsel %vm177_vm0, %v480_v44, 0.0 }
  0xfc   :  { %482 = vst.msk [vmem:[%s943_s4] sm:$0xff] %vm177_vm0, %v721_v45  ;;  %v486_v48 = vsel %vm177_vm0, %v721_v45, 0.0  ;;  %v499_v49 = vmul.f32 %v721_v45, %v721_v45  ;;  %v508_v62 = vsel %vm177_vm0, %v502_v53, 0.0 }
  0xfd   :  { %v504_v51 = vsel %vm177_vm0, %v500_v47, 0.0  ;;  %v488_v52 = vadd.f32 %v487_v46, %v486_v48  ;;  %v506_v59 = vsel %vm177_vm0, %v501_v50, 0.0 }
  0xfe   :  { %v503_v54 = vsel %vm177_vm0, %v499_v49, 0.0 }
  0xff   :  { %v505_v56 = vadd.f32 %v504_v51, %v503_v54  ;;  %v490_v57 = vadd.f32 %v489_v55, %v488_v52 }
 0x101   :  { %v492_v60 = vadd.f32 %v491_v58, %v490_v57  ;;  %v507_v61 = vadd.f32 %v506_v59, %v505_v56 }
 0x103   :  { %v493_v63 = vrot.slane %v492_v60, 4  ;;  %v509_v0 = vadd.f32 %v508_v62, %v507_v61 }
 0x105   :  { %v494_v1 = vadd.f32 %v493_v63, %v492_v60  ;;  %v510_v2 = vrot.slane %v509_v0, 4 }
 0x107   :  { %v495_v3 = vrot.slane %v494_v1, 2  ;;  %v511_v4 = vadd.f32 %v510_v2, %v509_v0 }
 0x109   :  { %v496_v5 = vadd.f32 %v495_v3, %v494_v1  ;;  %v512_v6 = vrot.slane %v511_v4, 2 }
 0x10b   :  { %v497_v7 = vrot.slane %v496_v5, 1  ;;  %v513_v9 = vadd.f32 %v512_v6, %v511_v4 }
 0x10d   :  { %v514_v10 = vrot.slane %v513_v9, 1  ;;  %v498_v11 = vadd.f32 %v497_v7, %v496_v5 }
 0x10f   :  { %v515_v12 = vadd.f32 %v514_v10, %v513_v9 }
 0x111   :  { %v517_v13 = vsel %vm516_vm11, %v498_v11, %v515_v12 }
 0x112   :  { %519 = vst.msk [vmem:[%s944_s5] sm:$0x3] %vm518_vm12, %v517_v13 }

// kernel: residual_block_d.5
= control target key start
LH: loop header
LB: loop body
LE: loop exit
PB: predicated region body
PF: predicated region fallthrough
CT: control target
= control target key end

     0   :  { %s104_s0 = inlined_call_operand.vmem [shape: f32[16,128], index: 0, kind: input, shape index: {}]   ;;  %s105_s1 = inlined_call_operand.vmem [shape: f32[16,128], index: 1, kind: input, shape index: {}]   ;;  %s106_s2 = inlined_call_operand.vmem [shape: f32[1,128], index: 2, kind: input, shape index: {}]   ;;  %s107_s3 = inlined_call_operand.vmem [shape: f32[1,128], index: 3, kind: input, shape index: {}]   ;;  %s108_s4 = inlined_call_operand.vmem [shape: f32[16,128], index: 4, kind: output, shape index: {}]  }
   0x1   :  { %v17_v0 = vld [vmem:[%s104_s0] sm:$0xff]  ;;  %v18_v4 = vld [vmem:[%s104_s0 + $0x8] sm:$0xff] }
   0x2   :  { %v53_v1 = vld [vmem:[%s106_s2] ss:$0 sm:$0xff]  ;;  %v38_v8 = vld [vmem:[%s105_s1 + $0x8] sm:$0xff] }
   0x3   :  { %v54_v2 = vld [vmem:[%s107_s3] ss:$0 sm:$0xff]  ;;  %v26_v3 = vmul.f32 %v53_v1, %v17_v0  ;;  %v27_v6 = vmul.f32 %v53_v1, %v18_v4 }
   0x4   :  { %v37_v5 = vld [vmem:[%s105_s1] sm:$0xff] }
   0x5   :  { %v35_v7 = vadd.f32 %v54_v2, %v26_v3  ;;  %v36_v9 = vadd.f32 %v54_v2, %v27_v6 }
   0x7   :  { %v39_v10 = vadd.f32 %v37_v5, %v35_v7  ;;  %v40_v11 = vadd.f32 %v38_v8, %v36_v9 }
   0x9   :  { %vm41_vm0 = vcmp.gt.f32.partialorder %v39_v10, 0.0  ;;  %v43_v12 = vmul.f32 0.2, %v39_v10  ;;  %vm42_vm1 = vcmp.gt.f32.partialorder %v40_v11, 0.0  ;;  %v44_v13 = vmul.f32 0.2, %v40_v11 }
   0xb   :  { %v45_v14 = vsel %vm41_vm0, %v39_v10, %v43_v12  ;;  %v46_v15 = vsel %vm42_vm1, %v40_v11, %v44_v13 }
   0xc   :  { %47 = vst [vmem:[%s108_s4] sm:$0xff] %v45_v14  ;;  %48 = vst [vmem:[%s108_s4 + $0x8] sm:$0xff] %v46_v15 }

</bundles_post_ra>
